<compile_context>
chip_gen: v7x
topology: tpu7x:2x2x1
jax: 0.10.0
libtpu: 0.0.40
codegen_flags: <defaults>
</compile_context>

<pallas_src>
import math
import jax
import jax.numpy as jnp
from jax import lax
from jax.experimental import pallas as pl
from jax.experimental.pallas import tpu as pltpu


def graphite_block_kernel(z_ref, w1_ref, w2_ref, o_ref):
    z = z_ref[...]                                   # (n, k0)  f32
    w1 = w1_ref[...]                                 # (k0, hidden)
    w2 = w2_ref[...]                                 # (hidden, out_dim)
    n_rows = z.shape[0]

    # ---- prepare_Z (shared: both layers are called with the same Z) ----
    # normalise(Z, dim=1): divide each row by its L2 norm.
    z_norm = z * lax.rsqrt(jnp.sum(z * z, axis=1, keepdims=True))        # (n, k0)
    # get_degree(z_norm) = (t * t.sum(dim=0)).sum(dim=1)
    deg_z = jnp.sum(z_norm * jnp.sum(z_norm, axis=0, keepdims=True),
                    axis=1, keepdims=True)                               # (n, 1)
    # get_degree(normalise(ones(n,k))) == n exactly:
    #   entries are 1/sqrt(k), colsum = n/sqrt(k), product = n/k, summed -> n.
    mult = lax.rsqrt(deg_z + float(n_rows))                              # (n, 1)
    z_ = z_norm * mult                                                   # (n, k0)

    # ---- shared mixing (Gram) matrix, computed once for both layers ----
    #   A = Z_ Z_^T + ones_ ones_^T  and  ones_ ones_^T == mult mult^T exactly
    #   (every row of the normalised ones matrix is the constant 1/sqrt(k)).
    a = (lax.dot_general(z_, z_, (((1,), (1,)), ((), ())),
                         preferred_element_type=jnp.float32)
         + lax.dot_general(mult, mult, (((1,), (1,)), ((), ())),
                           preferred_element_type=jnp.float32))          # (n, n)

    def layer(h, w):
        hw = jnp.dot(h, w, preferred_element_type=jnp.float32)           # (n, d)
        # activation: torch.relu for both layers of GraphiteBlock
        return jnp.maximum(jnp.dot(a, hw, preferred_element_type=jnp.float32), 0.0)

    h = layer(z, w1)                 # layer 1: H   = l1(Z, Z)
    out = layer(h, w2)               # layer 2: out = l2(Z, H)
    o_ref[...] = out.astype(o_ref.dtype)


def graphite_block(Z, W1, W2):
    """Z: (B, n, k0) or (n, k0) f32. W1: (k0, hidden), W2: (hidden, out_dim).

    W1 / W2 are the transposes of the PyTorch nn.Linear weights
    (GraphiteLayer uses nn.Linear(..., bias=False), so no bias term).
    """
    squeeze = Z.ndim == 2
    if squeeze:
        Z = Z[None]
    batch, n, k0 = Z.shape
    hidden = W1.shape[1]
    out_dim = W2.shape[1]

    flops_per_graph = (
        2 * n * n * (k0 + 1)           # Gram matrix A
        + 2 * n * k0 * hidden          # Z @ W1
        + 2 * n * n * hidden           # A @ (Z W1)
        + 2 * n * hidden * out_dim     # H @ W2
        + 2 * n * n * out_dim          # A @ (H W2)
    )
    cost = pl.CostEstimate(
        flops=batch * flops_per_graph,
        transcendentals=batch * 2 * n,     # two rsqrt passes over n rows
        bytes_accessed=4 * (batch * n * k0 + k0 * hidden
                            + hidden * out_dim + batch * n * out_dim),
    )

    out = pl.pallas_call(
        graphite_block_kernel,
        out_shape=jax.ShapeDtypeStruct((batch, n, out_dim), jnp.float32),
        grid=(batch,),
        in_specs=[
            # one graph per grid step; leading batch dim squeezed away
            pl.BlockSpec((pl.Squeezed(), n, k0), lambda b: (b, 0, 0)),
            # weights shared across all graphs (constant index_map -> stays resident)
            pl.BlockSpec((k0, hidden), lambda b: (0, 0)),
            pl.BlockSpec((hidden, out_dim), lambda b: (0, 0)),
        ],
        out_specs=pl.BlockSpec((pl.Squeezed(), n, out_dim), lambda b: (b, 0, 0)),
        compiler_params=pltpu.CompilerParams(
            dimension_semantics=("parallel",)),   # v7x: shard batch over 2 TCs
        cost_estimate=cost,
    )(Z, W1, W2)
    return out[0] if squeeze else out


def _reference_block(Z, W1, W2):
    """Pure-JAX port of the PyTorch module (single graph) for checking."""
    n, k = Z.shape

    def prepare(Zm):
        Zn = Zm / jnp.linalg.norm(Zm, axis=1, keepdims=True)
        ones = jnp.full((n, k), 1.0 / math.sqrt(k), dtype=Zm.dtype)

        def deg(t):
            return jnp.sum(t * jnp.sum(t, axis=0, keepdims=True),
                           axis=1, keepdims=True)

        mult = (deg(Zn) + deg(ones)) ** -0.5
        return Zn * mult, ones * mult

    def layer(Zp, onesp, H, W):
        HW = H @ W
        return jax.nn.relu(Zp @ (Zp.T @ HW) + onesp @ (onesp.T @ HW))

    Zp, onesp = prepare(Z)
    H = layer(Zp, onesp, Z, W1)
    return layer(Zp, onesp, H, W2)


if __name__ == "__main__":
    # Shapes implied by the module: n = 20 nodes, k0 = 6 input features,
    # GraphiteBlock(in_dim=k0, hidden_dim=16, out_dim=8); batch of 8 graphs.
    n, k0, hidden_dim, out_dim = 20, 6, 16, 8
    batch = 8

    key = jax.random.PRNGKey(0)
    kz, kw1, kw2 = jax.random.split(key, 3)
    Z = jax.random.normal(kz, (batch, n, k0), dtype=jnp.float32)
    # nn.Linear default init: U(-1/sqrt(in_dim), 1/sqrt(in_dim)); stored here
    # pre-transposed as (in_dim, out_dim).
    b1 = 1.0 / math.sqrt(k0)
    W1 = jax.random.uniform(kw1, (k0, hidden_dim), dtype=jnp.float32,
                            minval=-b1, maxval=b1)
    b2 = 1.0 / math.sqrt(hidden_dim)
    W2 = jax.random.uniform(kw2, (hidden_dim, out_dim), dtype=jnp.float32,
                            minval=-b2, maxval=b2)

    # Batched call: one pallas_call, grid over graphs.
    out = graphite_block(Z, W1, W2)
    jax.block_until_ready(out)
    assert out.shape == (batch, n, out_dim)

    ref = jax.vmap(lambda z: _reference_block(z, W1, W2))(Z)
    assert jnp.allclose(out, ref, rtol=1e-4, atol=1e-4), "batched mismatch vs reference"

    # Single-graph call (matches the torch module's forward signature).
    out1 = graphite_block(Z[0], W1, W2)
    jax.block_until_ready(out1)
    assert out1.shape == (n, out_dim)
    assert jnp.allclose(out1, ref[0], rtol=1e-4, atol=1e-4), "single-graph mismatch"

    print("KERNEL_OK")
</pallas_src>

<mosaic_0001>
module attributes {stable_mosaic.version = 11 : i64} {
  func.func @graphite_block_kernel(%arg0: i32, %arg1: memref<1x20x6xf32, #tpu.memory_space<vmem>>, %arg2: memref<6x16xf32, #tpu.memory_space<vmem>>, %arg3: memref<16x8xf32, #tpu.memory_space<vmem>>, %arg4: memref<1x20x8xf32, #tpu.memory_space<vmem>>) attributes {dimension_semantics = [#tpu.dimension_semantics<parallel>], iteration_bounds = array<i64: 8>, scalar_prefetch = 0 : i64, scratch_operands = 0 : i64, tpu.core_type = #tpu.core_type<tc>, window_params = [{transform_indices = @transform_0, window_bounds = array<i64: 1, 20, 6>}, {pipeline_mode = #tpu.pipeline_mode<synchronous>, transform_indices = @transform_1, window_bounds = array<i64: 6, 16>}, {pipeline_mode = #tpu.pipeline_mode<synchronous>, transform_indices = @transform_2, window_bounds = array<i64: 16, 8>}, {transform_indices = @transform_3, window_bounds = array<i64: 1, 20, 8>}]} {
    %c0 = arith.constant 0 : index
    %c0_0 = arith.constant 0 : index
    %c0_1 = arith.constant 0 : index
    %0 = vector.load %arg1[%c0, %c0_0, %c0_1] : memref<1x20x6xf32, #tpu.memory_space<vmem>>, vector<1x20x6xf32>
    %1 = vector.shape_cast %0 : vector<1x20x6xf32> to vector<20x6xf32>
    %c0_2 = arith.constant 0 : index
    %c0_3 = arith.constant 0 : index
    %2 = vector.load %arg2[%c0_2, %c0_3] : memref<6x16xf32, #tpu.memory_space<vmem>>, vector<6x16xf32>
    %c0_4 = arith.constant 0 : index
    %c0_5 = arith.constant 0 : index
    %3 = vector.load %arg3[%c0_4, %c0_5] : memref<16x8xf32, #tpu.memory_space<vmem>>, vector<16x8xf32>
    %4 = arith.mulf %1, %1 : vector<20x6xf32>
    %cst = arith.constant dense<0.000000e+00> : vector<20xf32>
    %5 = vector.multi_reduction <add>, %4, %cst [1] : vector<20x6xf32> to vector<20xf32>
    %6 = vector.shape_cast %5 : vector<20xf32> to vector<20x1xf32>
    %7 = math.rsqrt %6 : vector<20x1xf32>
    %8 = vector.broadcast %7 : vector<20x1xf32> to vector<20x6xf32>
    %9 = arith.mulf %1, %8 : vector<20x6xf32>
    %cst_6 = arith.constant dense<0.000000e+00> : vector<6xf32>
    %10 = vector.multi_reduction <add>, %9, %cst_6 [0] : vector<20x6xf32> to vector<6xf32>
    %11 = vector.shape_cast %10 : vector<6xf32> to vector<1x6xf32>
    %12 = vector.broadcast %11 : vector<1x6xf32> to vector<20x6xf32>
    %13 = arith.mulf %9, %12 : vector<20x6xf32>
    %cst_7 = arith.constant dense<0.000000e+00> : vector<20xf32>
    %14 = vector.multi_reduction <add>, %13, %cst_7 [1] : vector<20x6xf32> to vector<20xf32>
    %15 = vector.shape_cast %14 : vector<20xf32> to vector<20x1xf32>
    %cst_8 = arith.constant 2.000000e+01 : f32
    %16 = vector.broadcast %cst_8 : f32 to vector<20x1xf32>
    %17 = arith.addf %15, %16 : vector<20x1xf32>
    %18 = math.rsqrt %17 : vector<20x1xf32>
    %19 = vector.broadcast %18 : vector<20x1xf32> to vector<20x6xf32>
    %20 = arith.mulf %9, %19 : vector<20x6xf32>
    %cst_9 = arith.constant dense<0.000000e+00> : vector<20x20xf32>
    %21 = tpu.matmul %20, %20, %cst_9 {dimension_numbers = #tpu.dot_dimension_numbers<[1], [1], [0], [0], [0, 0, 1, 0], [], []>} : vector<20x6xf32>, vector<20x6xf32>, vector<20x20xf32> -> vector<20x20xf32>
    %cst_10 = arith.constant dense<0.000000e+00> : vector<20x20xf32>
    %22 = tpu.matmul %18, %18, %cst_10 {dimension_numbers = #tpu.dot_dimension_numbers<[1], [1], [0], [0], [0, 0, 1, 0], [], []>} : vector<20x1xf32>, vector<20x1xf32>, vector<20x20xf32> -> vector<20x20xf32>
    %23 = arith.addf %21, %22 : vector<20x20xf32>
    %cst_11 = arith.constant dense<0.000000e+00> : vector<20x16xf32>
    %24 = tpu.matmul %1, %2, %cst_11 {dimension_numbers = #tpu.dot_dimension_numbers<[1], [0], [0], [1], [0, 0, 1, 1], [], []>} : vector<20x6xf32>, vector<6x16xf32>, vector<20x16xf32> -> vector<20x16xf32>
    %cst_12 = arith.constant dense<0.000000e+00> : vector<20x16xf32>
    %25 = tpu.matmul %23, %24, %cst_12 {dimension_numbers = #tpu.dot_dimension_numbers<[1], [0], [0], [1], [0, 0, 1, 1], [], []>} : vector<20x20xf32>, vector<20x16xf32>, vector<20x16xf32> -> vector<20x16xf32>
    %cst_13 = arith.constant 0.000000e+00 : f32
    %26 = vector.broadcast %cst_13 : f32 to vector<20x16xf32>
    %27 = arith.maximumf %25, %26 : vector<20x16xf32>
    %cst_14 = arith.constant dense<0.000000e+00> : vector<20x8xf32>
    %28 = tpu.matmul %27, %3, %cst_14 {dimension_numbers = #tpu.dot_dimension_numbers<[1], [0], [0], [1], [0, 0, 1, 1], [], []>} : vector<20x16xf32>, vector<16x8xf32>, vector<20x8xf32> -> vector<20x8xf32>
    %cst_15 = arith.constant dense<0.000000e+00> : vector<20x8xf32>
    %29 = tpu.matmul %23, %28, %cst_15 {dimension_numbers = #tpu.dot_dimension_numbers<[1], [0], [0], [1], [0, 0, 1, 1], [], []>} : vector<20x20xf32>, vector<20x8xf32>, vector<20x8xf32> -> vector<20x8xf32>
    %cst_16 = arith.constant 0.000000e+00 : f32
    %30 = vector.broadcast %cst_16 : f32 to vector<20x8xf32>
    %31 = arith.maximumf %29, %30 : vector<20x8xf32>
    %c0_17 = arith.constant 0 : index
    %c0_18 = arith.constant 0 : index
    %c0_19 = arith.constant 0 : index
    %32 = vector.load %arg4[%c0_17, %c0_18, %c0_19] : memref<1x20x8xf32, #tpu.memory_space<vmem>>, vector<1x20x8xf32>
    %33 = vector.shape_cast %32 : vector<1x20x8xf32> to vector<20x8xf32>
    %34 = vector.shape_cast %31 : vector<20x8xf32> to vector<1x20x8xf32>
    tpu.vector_store %arg4[%c0_17, %c0_18, %c0_19], %34 {strides = array<i32>} : memref<1x20x8xf32, #tpu.memory_space<vmem>>, vector<1x20x8xf32>,
    return
  }
  func.func @transform_0(%arg0: i32) -> (i32, i32, i32) {
    %c0_i32 = arith.constant 0 : i32
    %c0_i32_0 = arith.constant 0 : i32
    %c0_i32_1 = arith.constant 0 : i32
    return %arg0, %c0_i32, %c0_i32_0 : i32, i32, i32
  }
  func.func @transform_1(%arg0: i32) -> (i32, i32) {
    %c0_i32 = arith.constant 0 : i32
    %c0_i32_0 = arith.constant 0 : i32
    %c0_i32_1 = arith.constant 0 : i32
    return %c0_i32, %c0_i32_0 : i32, i32
  }
  func.func @transform_2(%arg0: i32) -> (i32, i32) {
    %c0_i32 = arith.constant 0 : i32
    %c0_i32_0 = arith.constant 0 : i32
    %c0_i32_1 = arith.constant 0 : i32
    return %c0_i32, %c0_i32_0 : i32, i32
  }
  func.func @transform_3(%arg0: i32) -> (i32, i32, i32) {
    %c0_i32 = arith.constant 0 : i32
    %c0_i32_0 = arith.constant 0 : i32
    %c0_i32_1 = arith.constant 0 : i32
    return %arg0, %c0_i32, %c0_i32_0 : i32, i32, i32
  }
}

</mosaic_0001>

<bundles_post_ra>
// kernel: tpu_custom_call.1
= control target key start
LH: loop header
LB: loop body
LE: loop exit
PB: predicated region body
PF: predicated region fallthrough
CT: control target
= control target key end

     0   :  { %s1069_s12 = smov 0   ;;  %s1188_s0 = inlined_call_operand.vmem [shape: f32[8,20,6], index: 0, kind: input, shape index: {}]   ;;  %s1189_s1 = inlined_call_operand.vmem [shape: f32[6,16], index: 1, kind: input, shape index: {}]   ;;  %s1190_s2 = inlined_call_operand.vmem [shape: f32[16,8], index: 2, kind: input, shape index: {}]   ;;  %s1191_s3 = inlined_call_operand.vmem [shape: f32[8,20,8], index: 3, kind: output, shape index: {}]  }
   0x1 LB: > { %s834_s13 = sadd.s32 4294967295, %s1044_s12   ;;  %p838_p0 = scmp.ge.s32.totalorder %s1044_s12, 1  ;;  %s1044_s12 = sphi %s1069_s12, %s13_s12  }
   0x2   : > { %p137_p1 = scmp.lt.s32.totalorder %s1044_s12, 9 }
   0x4   : > { %p138_p2 = pnand %p838_p0, %p137_p1 }
   0x5   : > { %p161_p3 = scmp.lt.s32.totalorder (!%p138_p2), %s834_s13, 7  ;;  %vm180_vm0 = vcmask (!%p138_p2), 48128   ;;  %vm187_vm1 = vcmask (!%p138_p2), 44032   ;;  %v1046_v35 = vmov (!%p138_p2), 0.0|0.0   ;;  %v1047_v36 = vmov (!%p138_p2), 0.0   ;;  %v175_v59 = vld [vmem:[%s1190_s2] sm:$0xff] (!%p138_p2) }
   0x6   : > { %141 = sbr.rel (%p138_p2) target bundleno = 1249 (0x4e1), region = 32  ;;  %987 = vmatprep.subr.bf16.mxu0 (!%p138_p2), %v1046_v35  ;;  %933 = vmatprep.subr.mxu1 (!%p138_p2), %v1047_v36  ;;  %v174_v37 = vld [vmem:[%s1189_s1] sm:$0x3f] (!%p138_p2)  ;;  %vm417_vm2 = vcmask (!%p138_p2), 1045504   ;;  %vm1048_vm3 = vmmov (!%p138_p2), 0   ;;  %vm229_vm4 = vcmask (!%p138_p2), 7168   ;;  %vm993_vm6 = vmpackc.low (!%p138_p2), %vm180_vm0, %vm180_vm0 }
   0x7   : > { %934 = vmatpush3.msk.msra.mxu1 (!%p138_p2), %vm417_vm2, %v174_v37  ;;  %935 = vmatprep.mubr.msk.f32.mxu1 (!%p138_p2), %vm1048_vm3, %v1047_v36  ;;  %vm989_vm5 = vmpackc.low (!%p138_p2), %vm229_vm4, %vm229_vm4  ;;  %vm511_vm7 = vcmask (!%p138_p2), 1043456   ;;  %v176_v60 = vld [vmem:[%s1190_s2 + $0x8] sm:$0xff] (!%p138_p2)  ;;  %vm501_vm8 = vcmask (!%p138_p2), 162816   ;;  %vm598_vm9 = vcmask (!%p138_p2), 130048   ;;  %vm774_vm10 = vcmask (!%p138_p2), 64512  }
   0x8   : > { %909 = vmatprep.mubr.msk.f32.mxu0 (!%p138_p2), %vm1048_vm3, %v1047_v36  ;;  %995 = vmatprep.subr.bf16.mxu1 (!%p138_p2), %v1046_v35  ;;  %v999_v61 = vpack.c.bf16 (!%p138_p2), %v176_v60, %v175_v59  ;;  %vm777_vm11 = vcmask (!%p138_p2), 60416  }
   0xd   : > { %s1193_s13 = smov (!%p161_p3, %s834_s13), 7 }
   0xe   : > { %s1014_s14 = smul.u32 24, %s1193_s13 }
  0x10   : > { %s165_s17 = scalar_lea.vmem %s1188_s0, %s1014_s14  ;;  %s170_s26 = scalar_lea.vmem %s1191_s3, %s1014_s14 }
  0x11   : > { %v171_v0 = vld [vmem:[%s165_s17] sm:$0xff]  ;;  %v172_v1 = vld [vmem:[%s165_s17 + $0x8] sm:$0xff]  ;;  %v173_v2 = vld [vmem:[%s165_s17 + $0x10] sm:$0xf] }
  0x12   : > { %v177_v3 = vmul.f32 %v171_v0, %v171_v0  ;;  %v178_v4 = vmul.f32 %v172_v1, %v172_v1  ;;  %v179_v5 = vmul.f32 %v173_v2, %v173_v2  ;;  %936 = vmatmul.mubr.msk.f32.vlgmr.msra.gmra.mrb[0].mxu1 %vm180_vm0, %v171_v0 }
  0x13   : > { %938 = vmatprep.mubr.msk.f32.mxu1 %vm1048_vm3, %v1047_v36 }
  0x14   : > { %v181_v6 = vsel %vm180_vm0, %v177_v3, 0.0  ;;  %v188_v7 = vsel %vm187_vm1, %v179_v5, 0.0  ;;  %v184_v8 = vsel %vm180_vm0, %v178_v4, 0.0 }
  0x15   : > { %182 = vadd.xlane.f32.xlu0 %v181_v6  ;;  %189 = vadd.xlane.f32.xlu1 %v188_v7 }
  0x16   : > { %939 = vmatmul.mubr.msk.f32.gmra.mrb[2].mxu1 %vm180_vm0, %v172_v1 }
  0x17   : > { %941 = vmatprep.mubr.msk.f32.mxu1 %vm1048_vm3, %v1047_v36 }
  0x19   : > { %185 = vadd.xlane.f32.xlu0 %v184_v8 }
  0x1a   : > { %942 = vmatmul.mubr.msk.f32.gmra.mrb[4].mxu1 %vm180_vm0, %v173_v2 }
  0x1b   : > { %950 = vmatprep.mubr.msk.f32.mxu1 %vm1048_vm3, %v1047_v36 }
  0xa2   : > { %v183_v9 = vpop.xlane.xlu0 %182  ;;  %v190_v10 = vpop.xlane.xlu1 %189 }
  0xa3   : > { %1026 = vrsqrt.f32 %v183_v9 }
  0xa4   : > { %1028 = vrsqrt.f32 %v190_v10 }
  0xa6   : > { %v186_v11 = vpop.xlane.xlu0 %185 }
  0xa7   : > { %1030 = vrsqrt.f32 %v186_v11 }
  0xad   : > { %v1027_v12 = vpop.eup %1026 }
  0xae   : > { %v1029_v13 = vpop.eup %1028  ;;  %v194_v14 = vmul.f32 %v1027_v12, %v171_v0 }
  0xaf   : > { %v1088_v15 = vmul.f32 %v1029_v13, %v173_v2 }
  0xb0   : > { %v197_v18 = vsel %vm180_vm0, %v194_v14, 0.0 }
  0xb1   : > { %v1031_v16 = vpop.eup %1030  ;;  %v200_v20 = vsel %vm187_vm1, %v1088_v15, 0.0 }
  0xb2   : > { %v195_v17 = vmul.f32 %v1031_v16, %v172_v1 }
  0xb4   : > { %v198_v19 = vsel %vm180_vm0, %v195_v17, 0.0 }
  0xb5   : > { %v199_v21 = vadd.f32 %v198_v19, %v197_v18 }
  0xb7   : > { %v201_v22 = vadd.f32 %v200_v20, %v199_v21 }
  0xb9   : > { %v202_v23 = vrot.slane %v201_v22, 4 }
  0xbb   : > { %v203_v24 = vadd.f32 %v202_v23, %v201_v22 }
  0xbd   : > { %v204_v25 = vrot.slane %v203_v24, 2 }
  0xbf   : > { %v205_v26 = vadd.f32 %v204_v25, %v203_v24 }
  0xc1   : > { %v206_v27 = vrot.slane %v205_v26, 1 }
  0xc3   : > { %v207_v28 = vadd.f32 %v206_v27, %v205_v26 }
  0xc5   : > { %v209_v29 = vmul.f32 %v207_v28, %v195_v17  ;;  %v208_v30 = vmul.f32 %v207_v28, %v194_v14  ;;  %v210_v33 = vmul.f32 %v207_v28, %v1088_v15 }
  0xc7   : > { %v214_v31 = vsel %vm180_vm0, %v209_v29, 0.0  ;;  %v211_v32 = vsel %vm180_vm0, %v208_v30, 0.0  ;;  %v217_v34 = vsel %vm187_vm1, %v210_v33, 0.0 }
  0xc8   : > { %215 = vadd.xlane.f32.xlu0 %v214_v31  ;;  %212 = vadd.xlane.f32.xlu1 %v211_v32 }
  0xcc   : > { %218 = vadd.xlane.f32.xlu1 %v217_v34 }
  0xe5   : > { %v487_v52 = vpop.f32.mrb[0].mxu1 }
  0xe6   : > { %v937_v53 = vpop.f32.mrb[1].mxu1 }
  0xe9   : > { %v492_v54 = vpop.f32.mrb[2].mxu1 }
  0xea   : > { %v996_v55 = vpack.c.bf16 %v492_v54, %v487_v52  ;;  %v940_v56 = vpop.f32.mrb[3].mxu1 }
  0xec   : > { %997 = vmatpush3.bf16.msra.mxu1 %v996_v55 }
  0xed   : > { %v497_v57 = vpop.f32.mrb[4].mxu1  ;;  %948 = vmatprep.subr.mxu1 %v1047_v36 }
  0xee   : > { %v943_v58 = vpop.f32.mrb[5].mxu1 }
  0xf0   : > { %949 = vmatpush3.msk.msra.mxu1 %vm511_vm7, %v497_v57 }
  0xf1   : > { %998 = vmatprep.subr.bf16.mxu1 %v1046_v35 }
 0x155   : > { %v216_v38 = vpop.xlane.xlu0 %215  ;;  %v213_v39 = vpop.xlane.xlu1 %212 }
 0x156   : > { %v221_v40 = vadd.f32 20.0, %v216_v38  ;;  %v220_v41 = vadd.f32 20.0, %v213_v39 }
 0x158   : > { %1032 = vrsqrt.f32 %v221_v40 }
 0x159   : > { %1034 = vrsqrt.f32 %v220_v41  ;;  %v219_v42 = vpop.xlane.xlu1 %218 }
 0x15a   : > { %v222_v43 = vadd.f32 20.0, %v219_v42 }
 0x15c   : > { %1036 = vrsqrt.f32 %v222_v43 }
 0x162   : > { %v1033_v44 = vpop.eup %1032 }
 0x163   : > { %v1035_v45 = vpop.eup %1034  ;;  %v227_v48 = vmul.f32 %v1033_v44, %v195_v17 }
 0x164   : > { %v988_v46 = vpack.c.bf16 %v1033_v44, %v1035_v45  ;;  %v226_v47 = vmul.f32 %v1035_v45, %v194_v14 }
 0x166   : > { %990 = vmatpush3.bf16.xpose.msk.msra.mxu0 %vm989_vm5, %v988_v46  ;;  %v1037_v49 = vpop.eup %1036  ;;  %v992_v50 = vpack.c.bf16 %v227_v48, %v226_v47 }
 0x167   : > { %907 = vmatprep.subr.mxu0 %v1047_v36  ;;  %v228_v51 = vmul.f32 %v1037_v49, %v1088_v15 }
 0x16e   : > { %908 = vmatpush3.xpose.msk.msra.mxu0 %vm229_vm4, %v1037_v49 }
 0x16f   : > { %991 = vmatprep.subr.bf16.mxu0 %v1046_v35 }
 0x171   : > { %910 = vmatmul.mubr.msk.f32.vlgmr.msra.gmra.mrb[0].mxu0 %vm229_vm4, %v1035_v45 }
 0x172   : > { %994 = vmatpush3.bf16.xpose.msk.msra.mxu0 %vm993_vm6, %v992_v50  ;;  %912 = vmatprep.mubr.msk.f32.mxu0 %vm1048_vm3, %v1047_v36 }
 0x173   : > { %922 = vmatprep.subr.mxu0 %v1047_v36 }
 0x175   : > { %913 = vmatmul.mubr.msk.f32.gmra.mrb[2].mxu0 %vm229_vm4, %v1033_v44 }
 0x176   : > { %915 = vmatprep.mubr.msk.f32.mxu0 %vm1048_vm3, %v1047_v36 }
 0x179   : > { %916 = vmatmul.mubr.msk.f32.gmra.mrb[4].mxu0 %vm229_vm4, %v1037_v49 }
 0x17a   : > { %923 = vmatpush3.xpose.msk.msra.mxu0 %vm180_vm0, %v228_v51  ;;  %924 = vmatprep.mubr.msk.f32.mxu0 %vm1048_vm3, %v1047_v36 }
 0x17b   : > { %1001 = vmatprep.subr.bf16.mxu0 %v1046_v35 }
 0x17d   : > { %925 = vmatmul.mubr.msk.f32.vlgmr.msra.gmra.mrb[0].mxu0 %vm180_vm0, %v226_v47 }
 0x17e   : > { %927 = vmatprep.mubr.msk.f32.mxu0 %vm1048_vm3, %v1047_v36 }
 0x181   : > { %928 = vmatmul.mubr.msk.f32.gmra.mrb[2].mxu0 %vm180_vm0, %v227_v48 }
 0x182   : > { %930 = vmatprep.mubr.msk.f32.mxu0 %vm1048_vm3, %v1047_v36 }
 0x185   : > { %931 = vmatmul.mubr.msk.f32.gmra.mrb[4].mxu0 %vm180_vm0, %v228_v51 }
 0x186   : > { %978 = vmatprep.mubr.msk.f32.mxu0 %vm1048_vm3, %v1047_v36 }
 0x250   : > { %v394_v62 = vpop.f32.mrb[0].mxu0 }
 0x251   : > { %v926_v63 = vpop.f32.mrb[1].mxu0  ;;  %951 = vmatmul.mubr.msk.f32.vlgmr.msra.gmra.mrb[6].mxu1 %vm501_vm8, %v394_v62 }
 0x252   : > { %953 = vmatprep.mubr.msk.f32.mxu1 %vm1048_vm3, %v1047_v36  ;;  %1000 = vmatpush3.bf16.msra.mxu1 %v999_v61 }
 0x253   : > { %1004 = vmatprep.subr.bf16.mxu1 %v1046_v35 }
 0x254   : > { %v399_v0 = vpop.f32.mrb[2].mxu0 }
 0x255   : > { %v929_v1 = vpop.f32.mrb[3].mxu0  ;;  %954 = vmatmul.mubr.msk.f32.gmra.mrb[8].mxu1 %vm501_vm8, %v399_v0 }
 0x256   : > { %956 = vmatprep.mubr.msk.f32.mxu1 %vm1048_vm3, %v1047_v36 }
 0x258   : > { %v404_v2 = vpop.f32.mrb[4].mxu0 }
 0x259   : > { %v932_v3 = vpop.f32.mrb[5].mxu0  ;;  %957 = vmatmul.mubr.msk.f32.gmra.mrb[10].mxu1 %vm501_vm8, %v404_v2 }
 0x25a   : > { %963 = vmatprep.mubr.msk.f32.mxu1 %vm1048_vm3, %v1047_v36 }
 0x324   : > { %v581_v4 = vpop.f32.mrb[6].mxu1 }
 0x325   : > { %v595_v5 = vmax.f32 %v581_v4, 0.0  ;;  %v952_v6 = vpop.f32.mrb[7].mxu1 }
 0x327   : > { %964 = vmatmul.mubr.msk.f32.vlgmr.msra.gmra.mrb[12].mxu1 %vm598_vm9, %v595_v5 }
 0x328   : > { %v586_v7 = vpop.f32.mrb[8].mxu1  ;;  %966 = vmatprep.mubr.msk.f32.mxu1 %vm1048_vm3, %v1047_v36 }
 0x329   : > { %v596_v8 = vmax.f32 %v586_v7, 0.0  ;;  %v955_v9 = vpop.f32.mrb[9].mxu1 }
 0x32b   : > { %967 = vmatmul.mubr.msk.f32.gmra.mrb[14].mxu1 %vm598_vm9, %v596_v8 }
 0x32c   : > { %v591_v10 = vpop.f32.mrb[10].mxu1  ;;  %969 = vmatprep.mubr.msk.f32.mxu1 %vm1048_vm3, %v1047_v36 }
 0x32d   : > { %v597_v11 = vmax.f32 %v591_v10, 0.0  ;;  %v958_v12 = vpop.f32.mrb[11].mxu1 }
 0x32f   : > { %970 = vmatmul.mubr.msk.f32.gmra.mrb[16].mxu1 %vm598_vm9, %v597_v11 }
 0x330   : > { %984 = vmatprep.mubr.msk.f32.mxu1 %vm1048_vm3, %v1047_v36 }
 0x3fa   : > { %v674_v13 = vpop.f32.mrb[12].mxu1 }
 0x3fb   : > { %v965_v14 = vpop.f32.mrb[13].mxu1 }
 0x3fe   : > { %v679_v15 = vpop.f32.mrb[14].mxu1 }
 0x3ff   : > { %v1002_v16 = vpack.c.bf16 %v679_v15, %v674_v13  ;;  %v968_v17 = vpop.f32.mrb[15].mxu1 }
 0x401   : > { %1003 = vmatpush3.bf16.msra.mxu0 %v1002_v16  ;;  %1006 = vmatpush3.bf16.msra.mxu1 %v1002_v16 }
 0x402   : > { %v684_v18 = vpop.f32.mrb[16].mxu1  ;;  %976 = vmatprep.subr.mxu0 %v1047_v36  ;;  %1005 = vmatprep.subr.mxu1 %v1047_v36 }
 0x403   : > { %v971_v19 = vpop.f32.mrb[17].mxu1 }
 0x405   : > { %977 = vmatpush3.msk.msra.mxu0 %vm511_vm7, %v684_v18  ;;  %1007 = vmatpush3.msk.msra.mxu1 %vm511_vm7, %v684_v18 }
 0x406   : > { %979 = vmatmul.mubr.msk.f32.vlgmr.msra.gmra.mrb[6].mxu0 %vm501_vm8, %v394_v62  ;;  %985 = vmatmul.mubr.msk.f32.vlgmr.msra.gmra.mrb[18].mxu1 %vm501_vm8, %v404_v2 }
 0x407   : > { %981 = vmatprep.mubr.msk.f32.mxu0 %vm1048_vm3, %v1047_v36 }
 0x40a   : > { %982 = vmatmul.mubr.msk.f32.gmra.mrb[8].mxu0 %vm501_vm8, %v399_v0 }
 0x4d9   : > { %v757_v20 = vpop.f32.mrb[6].mxu0  ;;  %v767_v21 = vpop.f32.mrb[18].mxu1 }
 0x4da   : > { %v771_v22 = vmax.f32 %v757_v20, 0.0  ;;  %v773_v23 = vmax.f32 %v767_v21, 0.0  ;;  %v980_v24 = vpop.f32.mrb[7].mxu0  ;;  %v986_v25 = vpop.f32.mrb[19].mxu1 }
 0x4dc   : > { %775 = vst.msk [vmem:[%s170_s26] sm:$0xff] %vm774_vm10, %v771_v22 }
 0x4dd   : > { %778 = vst.msk [vmem:[%s170_s26 + $0x10] sm:$0xf] %vm777_vm11, %v773_v23  ;;  %v762_v26 = vpop.f32.mrb[8].mxu0 }
 0x4de   : > { %v772_v27 = vmax.f32 %v762_v26, 0.0  ;;  %v983_v28 = vpop.f32.mrb[9].mxu0 }
 0x4e0   : > { %776 = vst.msk [vmem:[%s170_s26 + $0x8] sm:$0xff] %vm774_vm10, %v772_v27 }
 0x4e1 PF: > { %s13_s12 = sadd.s32 1, %s1044_s12  }
 0x4e2   : > { %p10_p4 = scmp.ge.s32.totalorder %s13_s12, 10  }
 0x4e4   :  { %12 = sbr.rel (!%p10_p4) target bundleno = 1 (0x1), region = 62 }

</bundles_post_ra>
